<compile_context>
chip_gen: v7x
topology: tpu7x:2x2x1
jax: 0.10.0
libtpu: 0.0.40
codegen_flags: <defaults>
</compile_context>

<pallas_src>
import functools
import numpy as np
import jax
import jax.numpy as jnp
from jax.experimental import pallas as pl
from jax.experimental.pallas import tpu as pltpu

# ---- Fbank default hyper-parameters ----
SAMPLE_RATE = 16000
N_FFT = 400
WIN_LENGTH = 400          # 25 ms * 16 kHz
HOP_LENGTH = 160          # 10 ms * 16 kHz
N_FREQ = N_FFT // 2 + 1   # 201 (onesided)
FREQ_PAD = 256            # 201 zero-padded to a lane multiple
N_MELS = 40
MEL_PAD = 128             # lane-dense output width
F_MIN = 0.0
F_MAX = SAMPLE_RATE / 2.0
AMIN = 1e-10
MULTIPLIER = 10.0         # power spectrogram -> 10*log10
TOP_DB = 80.0
CHUNK_EXTRA = 16          # halo chunk rows per tile (need 2, pad to bf16 tiling)
N_SLABS = 3               # each frame = 3 hop-sized chunks (last one half-used)

# TODO(synk): deltas / context / smoothPSD / repeatPSD / f_cut / mel_cut branches
# are disabled in the default Fbank config and are not implemented here.


def _hamming_window(n):
    # torch.hamming_window(n, periodic=True): 0.54 - 0.46*cos(2*pi*k/n)
    k = np.arange(n, dtype=np.float64)
    return 0.54 - 0.46 * np.cos(2.0 * np.pi * k / n)


def _dft_basis():
    """Fused windowed real-DFT basis, shape (3*hop, 2*FREQ_PAD) = (480, 512), bf16.

    Rows 0..399 hold window[n] * [cos | -sin] (freq padded 201 -> 256 with zero
    columns); rows 400..479 are zero so the third hop-chunk of each frame only
    contributes its first 80 samples.
    """
    n = np.arange(N_FFT, dtype=np.float64)[:, None]                  # (400, 1)
    k = np.arange(N_FREQ, dtype=np.float64)[None, :]                 # (1, 201)
    ang = 2.0 * np.pi * n * k / N_FFT
    w = _hamming_window(WIN_LENGTH)[:, None]
    basis = np.zeros((N_SLABS * HOP_LENGTH, 2 * FREQ_PAD), dtype=np.float32)
    basis[:N_FFT, :N_FREQ] = w * np.cos(ang)                         # real part
    basis[:N_FFT, FREQ_PAD:FREQ_PAD + N_FREQ] = -(w * np.sin(ang))   # imag part
    return jnp.asarray(basis, dtype=jnp.bfloat16)


def _mel_filterbank():
    """SpeechBrain triangular mel filterbank, zero-padded to (FREQ_PAD, MEL_PAD), bf16."""
    def to_mel(hz):
        return 2595.0 * np.log10(1.0 + hz / 700.0)

    def to_hz(mel):
        return 700.0 * (10.0 ** (mel / 2595.0) - 1.0)

    mel = np.linspace(to_mel(F_MIN), to_mel(F_MAX), N_MELS + 2)
    hz = to_hz(mel)
    band = (hz[1:] - hz[:-1])[:-1]                 # (n_mels,)
    f_central = hz[1:-1]                           # (n_mels,)
    all_freqs = np.linspace(0.0, SAMPLE_RATE // 2, N_FREQ)
    slope = (all_freqs[None, :] - f_central[:, None]) / band[:, None]
    tri = np.maximum(0.0, np.minimum(slope + 1.0, -slope + 1.0)).T   # (201, 40)
    out = np.zeros((FREQ_PAD, MEL_PAD), dtype=np.float32)
    out[:N_FREQ, :N_MELS] = tri.astype(np.float32)
    return jnp.asarray(out, dtype=jnp.bfloat16)


def _fbank_kernel(main_ref, halo_ref, basis_ref, mel_ref,
                  out_ref, max_ref, cbuf, *, tile):
    """Windowed DFT (3 bf16 K=160 matmuls) -> power -> bf16 mel matmul -> dB."""
    # Assemble the (tile + 16, 160) bf16 chunk window in VMEM scratch.
    cbuf[pl.ds(0, tile), :] = main_ref[0]
    cbuf[pl.ds(tile, CHUNK_EXTRA), :] = halo_ref[0]

    # Frame t needs chunk rows t, t+1, t+2; shift the bf16 LHS (cheap sublane
    # slices) so the f32 (tile, 512) matmul results stay aligned.
    y = jnp.dot(cbuf[pl.ds(0, tile), :],
                basis_ref[pl.ds(0, HOP_LENGTH), :],
                preferred_element_type=jnp.float32)                  # (tile, 512)
    y = y + jnp.dot(cbuf[pl.ds(1, tile), :],
                    basis_ref[pl.ds(HOP_LENGTH, HOP_LENGTH), :],
                    preferred_element_type=jnp.float32)
    y = y + jnp.dot(cbuf[pl.ds(2, tile), :],
                    basis_ref[pl.ds(2 * HOP_LENGTH, HOP_LENGTH), :],
                    preferred_element_type=jnp.float32)

    re = y[:, :FREQ_PAD]
    im = y[:, FREQ_PAD:]
    power = re * re + im * im                                        # (tile, 256) f32

    # Mel filterbank matmul on the fast bf16 MXU path, f32 accumulation.
    fb = jnp.dot(power.astype(jnp.bfloat16), mel_ref[...],
                 preferred_element_type=jnp.float32)                 # (tile, 128)
    fb_db = MULTIPLIER * jnp.log10(jnp.maximum(fb, AMIN))

    out_ref[0] = fb_db

    # Per-tile max for the fused top_db clamp.  Padded mel columns and padded
    # frame rows are exactly 10*log10(AMIN) = -100 dB, so the max over the
    # whole padded block equals the max over the valid entries.
    blk_max = jnp.max(fb_db, axis=0, keepdims=True)                  # (1, 128)
    max_ref[0, 0] = jnp.broadcast_to(blk_max, (8, MEL_PAD))


def _pick_tile(T, B):
    """Frame rows per grid step: large for long audio (amortize the ~0.35 us
    per-step overhead), tight for tiny inputs; split so the fully 'parallel'
    grid has >= 2 steps when possible (v7x has 2 TensorCores)."""
    if T >= 1024:
        tile = 1024
    elif T >= 512:
        tile = 512
    elif T >= 256:
        tile = 256
    elif T >= 128:
        tile = 128
    else:
        tile = max(16, 16 * ((T + 15) // 16))
    if B * pl.cdiv(T, tile) < 2 and T > 16:
        tile = max(16, 16 * (((T + 1) // 2 + 15) // 16))
    return tile


@jax.jit
def fbank(wav):
    """wav: (B, L) float32 -> (B, T, n_mels) float32 log-mel features."""
    B, L = wav.shape
    pad = N_FFT // 2
    T = 1 + (L + 2 * pad - N_FFT) // HOP_LENGTH
    tile = _pick_tile(T, B)
    n_tiles = pl.cdiv(T, tile)
    frames_padded = n_tiles * tile

    # Center pad with constant zeros (speechbrain STFT pad_mode='constant') and
    # extend so the signal is an exact number of hop-sized chunk rows, covering
    # the halo of the last tile.
    n_chunk_rows = frames_padded + CHUNK_EXTRA
    total = n_chunk_rows * HOP_LENGTH
    x = jnp.pad(wav, ((0, 0), (pad, total - pad - L))).astype(jnp.bfloat16)
    chunks = x.reshape(B, n_chunk_rows, HOP_LENGTH)                  # (B, R, 160)

    basis = _dft_basis()                                             # (480, 512) bf16
    mel_m = _mel_filterbank()                                        # (256, 128) bf16

    halo_blocks = tile // CHUNK_EXTRA                                # tile % 16 == 0

    flops = B * frames_padded * (
        N_SLABS * 2 * HOP_LENGTH * 2 * FREQ_PAD + 2 * FREQ_PAD * MEL_PAD)
    bytes_accessed = (
        B * n_chunk_rows * HOP_LENGTH * 2                            # chunk rows (bf16)
        + B * n_tiles * CHUNK_EXTRA * HOP_LENGTH * 2                 # halo re-reads
        + basis.size * 2 + mel_m.size * 2                            # constants
        + B * frames_padded * MEL_PAD * 4                            # log-mel out
        + B * n_tiles * 8 * MEL_PAD * 4)                             # per-tile max out

    out, tile_max = pl.pallas_call(
        functools.partial(_fbank_kernel, tile=tile),
        out_shape=(
            jax.ShapeDtypeStruct((B, frames_padded, MEL_PAD), jnp.float32),
            jax.ShapeDtypeStruct((B, n_tiles, 8, MEL_PAD), jnp.float32),
        ),
        grid_spec=pltpu.PrefetchScalarGridSpec(
            num_scalar_prefetch=0,
            grid=(B, n_tiles),
            in_specs=[
                # Main chunk rows of this tile.
                pl.BlockSpec((1, tile, HOP_LENGTH), lambda b, i: (b, i, 0)),
                # 16-row halo just after the tile (last frames need rows
                # tile, tile+1 relative to the tile start).
                pl.BlockSpec((1, CHUNK_EXTRA, HOP_LENGTH),
                             lambda b, i: (b, (i + 1) * halo_blocks, 0)),
                # Grid-invariant operands (constant index_map -> DMA'd once).
                pl.BlockSpec((N_SLABS * HOP_LENGTH, 2 * FREQ_PAD),
                             lambda b, i: (0, 0)),
                pl.BlockSpec((FREQ_PAD, MEL_PAD), lambda b, i: (0, 0)),
            ],
            out_specs=(
                pl.BlockSpec((1, tile, MEL_PAD), lambda b, i: (b, i, 0)),
                pl.BlockSpec((1, 1, 8, MEL_PAD), lambda b, i: (b, i, 0, 0)),
            ),
            scratch_shapes=[
                pltpu.VMEM((tile + CHUNK_EXTRA, HOP_LENGTH), jnp.bfloat16)],
        ),
        compiler_params=pltpu.CompilerParams(
            dimension_semantics=("parallel", "parallel"),
            vmem_limit_bytes=40 * 1024 * 1024),
        cost_estimate=pl.CostEstimate(
            flops=flops,
            transcendentals=B * frames_padded * MEL_PAD,
            bytes_accessed=bytes_accessed),
    )(chunks, chunks, basis, mel_m)

    # Drop padded frame rows and padded mel columns, then the top_db clamp:
    # Filterbank._amplitude_to_DB with ref_value=1 => db_multiplier = 0, then
    # clamp from below by (per-batch max over time & mel) - top_db.
    fb_db = out[:, :T, :N_MELS]
    new_max = jnp.max(tile_max, axis=(1, 2, 3)) - TOP_DB             # (B,)
    return jnp.maximum(fb_db, new_max[:, None, None])


if __name__ == "__main__":
    key = jax.random.PRNGKey(0)
    wav = jax.random.normal(key, (2, 3200), dtype=jnp.float32)       # 0.2 s @ 16 kHz
    feats = fbank(wav)
    jax.block_until_ready(feats)
    expected_T = 1 + 3200 // HOP_LENGTH                              # center-padded frames
    assert feats.shape == (2, expected_T, N_MELS), feats.shape
    assert feats.dtype == jnp.float32
    assert bool(jnp.all(jnp.isfinite(feats)))
    print("KERNEL_OK")
</pallas_src>

<mosaic_0001>
module attributes {stable_mosaic.version = 11 : i64} {
  func.func @_fbank_kernel(%arg0: i32, %arg1: i32, %arg2: memref<1x32x160xbf16, #tpu.memory_space<vmem>>, %arg3: memref<1x16x160xbf16, #tpu.memory_space<vmem>>, %arg4: memref<480x512xbf16, #tpu.memory_space<vmem>>, %arg5: memref<256x128xbf16, #tpu.memory_space<vmem>>, %arg6: memref<1x32x128xf32, #tpu.memory_space<vmem>>, %arg7: memref<1x1x8x128xf32, #tpu.memory_space<vmem>>, %arg8: memref<48x160xbf16, #tpu.memory_space<vmem>>) attributes {dimension_semantics = [#tpu.dimension_semantics<parallel>, #tpu.dimension_semantics<parallel>], iteration_bounds = array<i64: 2, 1>, scalar_prefetch = 0 : i64, scratch_operands = 1 : i64, tpu.core_type = #tpu.core_type<tc>, window_params = [{transform_indices = @transform_0, window_bounds = array<i64: 1, 32, 160>}, {transform_indices = @transform_1, window_bounds = array<i64: 1, 16, 160>}, {pipeline_mode = #tpu.pipeline_mode<synchronous>, transform_indices = @transform_2, window_bounds = array<i64: 480, 512>}, {pipeline_mode = #tpu.pipeline_mode<synchronous>, transform_indices = @transform_3, window_bounds = array<i64: 256, 128>}, {transform_indices = @transform_4, window_bounds = array<i64: 1, 32, 128>}, {transform_indices = @transform_5, window_bounds = array<i64: 1, 1, 8, 128>}]} {
    %c0 = arith.constant 0 : index
    %c0_0 = arith.constant 0 : index
    %c0_1 = arith.constant 0 : index
    %0 = vector.load %arg2[%c0, %c0_0, %c0_1] : memref<1x32x160xbf16, #tpu.memory_space<vmem>>, vector<1x32x160xbf16>
    %1 = vector.shape_cast %0 : vector<1x32x160xbf16> to vector<32x160xbf16>
    %c0_2 = arith.constant 0 : index
    %c0_3 = arith.constant 0 : index
    %2 = vector.load %arg8[%c0_2, %c0_3] : memref<48x160xbf16, #tpu.memory_space<vmem>>, vector<32x160xbf16>
    tpu.vector_store %arg8[%c0_2, %c0_3], %1 {strides = array<i32>} : memref<48x160xbf16, #tpu.memory_space<vmem>>, vector<32x160xbf16>,
    %c0_4 = arith.constant 0 : index
    %c0_5 = arith.constant 0 : index
    %c0_6 = arith.constant 0 : index
    %3 = vector.load %arg3[%c0_4, %c0_5, %c0_6] : memref<1x16x160xbf16, #tpu.memory_space<vmem>>, vector<1x16x160xbf16>
    %4 = vector.shape_cast %3 : vector<1x16x160xbf16> to vector<16x160xbf16>
    %c32 = arith.constant 32 : index
    %c0_7 = arith.constant 0 : index
    %5 = vector.load %arg8[%c32, %c0_7] : memref<48x160xbf16, #tpu.memory_space<vmem>>, vector<16x160xbf16>
    tpu.vector_store %arg8[%c32, %c0_7], %4 {strides = array<i32>} : memref<48x160xbf16, #tpu.memory_space<vmem>>, vector<16x160xbf16>,
    %c0_8 = arith.constant 0 : index
    %c0_9 = arith.constant 0 : index
    %6 = vector.load %arg8[%c0_8, %c0_9] : memref<48x160xbf16, #tpu.memory_space<vmem>>, vector<32x160xbf16>
    %c0_10 = arith.constant 0 : index
    %c0_11 = arith.constant 0 : index
    %7 = vector.load %arg4[%c0_10, %c0_11] : memref<480x512xbf16, #tpu.memory_space<vmem>>, vector<160x512xbf16>
    %cst = arith.constant dense<0.000000e+00> : vector<32x512xf32>
    %8 = tpu.matmul %6, %7, %cst {dimension_numbers = #tpu.dot_dimension_numbers<[1], [0], [0], [1], [0, 0, 1, 1], [], []>} : vector<32x160xbf16>, vector<160x512xbf16>, vector<32x512xf32> -> vector<32x512xf32>
    %c1 = arith.constant 1 : index
    %c0_12 = arith.constant 0 : index
    %9 = vector.load %arg8[%c1, %c0_12] : memref<48x160xbf16, #tpu.memory_space<vmem>>, vector<32x160xbf16>
    %c160 = arith.constant 160 : index
    %c0_13 = arith.constant 0 : index
    %10 = vector.load %arg4[%c160, %c0_13] : memref<480x512xbf16, #tpu.memory_space<vmem>>, vector<160x512xbf16>
    %cst_14 = arith.constant dense<0.000000e+00> : vector<32x512xf32>
    %11 = tpu.matmul %9, %10, %cst_14 {dimension_numbers = #tpu.dot_dimension_numbers<[1], [0], [0], [1], [0, 0, 1, 1], [], []>} : vector<32x160xbf16>, vector<160x512xbf16>, vector<32x512xf32> -> vector<32x512xf32>
    %12 = arith.addf %8, %11 : vector<32x512xf32>
    %c2 = arith.constant 2 : index
    %c0_15 = arith.constant 0 : index
    %13 = vector.load %arg8[%c2, %c0_15] : memref<48x160xbf16, #tpu.memory_space<vmem>>, vector<32x160xbf16>
    %c320 = arith.constant 320 : index
    %c0_16 = arith.constant 0 : index
    %14 = vector.load %arg4[%c320, %c0_16] : memref<480x512xbf16, #tpu.memory_space<vmem>>, vector<160x512xbf16>
    %cst_17 = arith.constant dense<0.000000e+00> : vector<32x512xf32>
    %15 = tpu.matmul %13, %14, %cst_17 {dimension_numbers = #tpu.dot_dimension_numbers<[1], [0], [0], [1], [0, 0, 1, 1], [], []>} : vector<32x160xbf16>, vector<160x512xbf16>, vector<32x512xf32> -> vector<32x512xf32>
    %16 = arith.addf %12, %15 : vector<32x512xf32>
    %17 = vector.extract_strided_slice %16 {offsets = [0, 0], sizes = [32, 256], strides = [1, 1]} : vector<32x512xf32> to vector<32x256xf32>
    %18 = vector.extract_strided_slice %16 {offsets = [0, 256], sizes = [32, 256], strides = [1, 1]} : vector<32x512xf32> to vector<32x256xf32>
    %19 = arith.mulf %17, %17 : vector<32x256xf32>
    %20 = arith.mulf %18, %18 : vector<32x256xf32>
    %21 = arith.addf %19, %20 : vector<32x256xf32>
    %22 = arith.truncf %21 : vector<32x256xf32> to vector<32x256xbf16>
    %c0_18 = arith.constant 0 : index
    %c0_19 = arith.constant 0 : index
    %23 = vector.load %arg5[%c0_18, %c0_19] : memref<256x128xbf16, #tpu.memory_space<vmem>>, vector<256x128xbf16>
    %cst_20 = arith.constant dense<0.000000e+00> : vector<32x128xf32>
    %24 = tpu.matmul %22, %23, %cst_20 {dimension_numbers = #tpu.dot_dimension_numbers<[1], [0], [0], [1], [0, 0, 1, 1], [], []>} : vector<32x256xbf16>, vector<256x128xbf16>, vector<32x128xf32> -> vector<32x128xf32>
    %cst_21 = arith.constant 1.000000e-10 : f32
    %25 = vector.broadcast %cst_21 : f32 to vector<32x128xf32>
    %26 = arith.maximumf %24, %25 : vector<32x128xf32>
    %27 = math.log %26 : vector<32x128xf32>
    %cst_22 = arith.constant 0.434294492 : f32
    %28 = vector.broadcast %cst_22 : f32 to vector<32x128xf32>
    %29 = arith.mulf %27, %28 : vector<32x128xf32>
    %cst_23 = arith.constant 1.000000e+01 : f32
    %30 = vector.broadcast %cst_23 : f32 to vector<32x128xf32>
    %31 = arith.mulf %30, %29 : vector<32x128xf32>
    %c0_24 = arith.constant 0 : index
    %c0_25 = arith.constant 0 : index
    %c0_26 = arith.constant 0 : index
    %32 = vector.load %arg6[%c0_24, %c0_25, %c0_26] : memref<1x32x128xf32, #tpu.memory_space<vmem>>, vector<1x32x128xf32>
    %33 = vector.shape_cast %32 : vector<1x32x128xf32> to vector<32x128xf32>
    %34 = vector.shape_cast %31 : vector<32x128xf32> to vector<1x32x128xf32>
    tpu.vector_store %arg6[%c0_24, %c0_25, %c0_26], %34 {strides = array<i32>} : memref<1x32x128xf32, #tpu.memory_space<vmem>>, vector<1x32x128xf32>,
    %cst_27 = arith.constant dense<0xFF800000> : vector<128xf32>
    %35 = vector.multi_reduction <maximumf>, %31, %cst_27 [0] : vector<32x128xf32> to vector<128xf32>
    %36 = vector.shape_cast %35 : vector<128xf32> to vector<1x128xf32>
    %37 = vector.shape_cast %36 : vector<1x128xf32> to vector<1x128xf32>
    %38 = vector.broadcast %37 : vector<1x128xf32> to vector<8x128xf32>
    %c0_28 = arith.constant 0 : index
    %c0_29 = arith.constant 0 : index
    %c0_30 = arith.constant 0 : index
    %c0_31 = arith.constant 0 : index
    %39 = vector.load %arg7[%c0_28, %c0_29, %c0_30, %c0_31] : memref<1x1x8x128xf32, #tpu.memory_space<vmem>>, vector<1x1x8x128xf32>
    %40 = vector.shape_cast %39 : vector<1x1x8x128xf32> to vector<8x128xf32>
    %41 = vector.shape_cast %38 : vector<8x128xf32> to vector<1x1x8x128xf32>
    tpu.vector_store %arg7[%c0_28, %c0_29, %c0_30, %c0_31], %41 {strides = array<i32>} : memref<1x1x8x128xf32, #tpu.memory_space<vmem>>, vector<1x1x8x128xf32>,
    return
  }
  func.func @transform_0(%arg0: i32, %arg1: i32) -> (i32, i32, i32) {
    %c0_i32 = arith.constant 0 : i32
    %c0_i32_0 = arith.constant 0 : i32
    return %arg0, %arg1, %c0_i32 : i32, i32, i32
  }
  func.func @transform_1(%arg0: i32, %arg1: i32) -> (i32, i32, i32) {
    %c1_i32 = arith.constant 1 : i32
    %0 = arith.addi %arg1, %c1_i32 : i32
    %c2_i32 = arith.constant 2 : i32
    %1 = arith.muli %0, %c2_i32 : i32
    %c0_i32 = arith.constant 0 : i32
    %c0_i32_0 = arith.constant 0 : i32
    return %arg0, %1, %c0_i32 : i32, i32, i32
  }
  func.func @transform_2(%arg0: i32, %arg1: i32) -> (i32, i32) {
    %c0_i32 = arith.constant 0 : i32
    %c0_i32_0 = arith.constant 0 : i32
    %c0_i32_1 = arith.constant 0 : i32
    return %c0_i32, %c0_i32_0 : i32, i32
  }
  func.func @transform_3(%arg0: i32, %arg1: i32) -> (i32, i32) {
    %c0_i32 = arith.constant 0 : i32
    %c0_i32_0 = arith.constant 0 : i32
    %c0_i32_1 = arith.constant 0 : i32
    return %c0_i32, %c0_i32_0 : i32, i32
  }
  func.func @transform_4(%arg0: i32, %arg1: i32) -> (i32, i32, i32) {
    %c0_i32 = arith.constant 0 : i32
    %c0_i32_0 = arith.constant 0 : i32
    return %arg0, %arg1, %c0_i32 : i32, i32, i32
  }
  func.func @transform_5(%arg0: i32, %arg1: i32) -> (i32, i32, i32, i32) {
    %c0_i32 = arith.constant 0 : i32
    %c0_i32_0 = arith.constant 0 : i32
    %c0_i32_1 = arith.constant 0 : i32
    return %arg0, %arg1, %c0_i32, %c0_i32_0 : i32, i32, i32, i32
  }
}

</mosaic_0001>

<bundles_post_ra>
// kernel: fbank.1
= control target key start
LH: loop header
LB: loop body
LE: loop exit
PB: predicated region body
PF: predicated region fallthrough
CT: control target
= control target key end

     0   :  { %s2475_s18 = smov 0   ;;  %s2477_s19 = smov 0   ;;  %s3001_s0 = inlined_call_operand.vmem [shape: bf16[2,48,160], index: 0, kind: input, shape index: {}, may-alias: {0,1}]   ;;  %s3002_s1 = inlined_call_operand.vmem [shape: bf16[2,48,160], index: 1, kind: input, shape index: {}, may-alias: {0,1}]   ;;  %s3003_s2 = inlined_call_operand.vmem [shape: bf16[480,512], index: 2, kind: input, shape index: {}]   ;;  %s3004_s3 = inlined_call_operand.vmem [shape: bf16[256,128], index: 3, kind: input, shape index: {}]   ;;  %s3005_s4 = inlined_call_operand.vmem [shape: f32[2,32,128], index: 4, kind: output, shape index: {0}]   ;;  %s3006_s5 = inlined_call_operand.vmem [shape: f32[2,1,8,128], index: 5, kind: output, shape index: {1}]  }
   0x1   :  { %s2479_s20 = smov 0  }
   0x2 LB: > { %s28_s21 = sadd.s32 1, %s2439_s19  ;;  %p1943_p0 = scmp.ge.s32.totalorder %s2443_s20, 1  ;;  %s2443_s20 = sphi %s2479_s20, %s16_s20   ;;  %s2439_s19 = sphi %s2477_s19, %s3008_s19   ;;  %s2435_s18 = sphi %s2475_s18, %s3007_s18  }
   0x3   : > { %p30_p1 = scmp.ge.s32.totalorder %s28_s21, 2  ;;  %p250_p2 = scmp.lt.s32.totalorder %s2443_s20, 3 }
   0x5   : > { %s3010_s21 = smov (%p30_p1, %s28_s21), 0  ;;  %p251_p3 = pnand %p1943_p0, %p250_p2 }
   0x6   : > { %v2211_v0 = vld [vmem:[%s3003_s2 + $0x144] ss:$16 sps:$4 sm:$0xff] (!%p251_p3)   ;;  %p317_p4 = scmp.lt.s32.totalorder (!%p251_p3), %s2435_s18, 1  ;;  %v2213_v1 = vld [vmem:[%s3003_s2 + $0x14c] ss:$16 sps:$4 sm:$0xff] (!%p251_p3)   ;;  %vm390_vm0 = vcmask (!%p251_p3), 261120  }
   0x7   : > { %254 = sbr.rel (%p251_p3) target bundleno = 610 (0x262), region = 36  ;;  %743 = vmatprep.subr.bf16.mxu0 (!%p251_p3), %v2211_v0  ;;  %v2215_v2 = vld [vmem:[%s3003_s2 + $0x140] ss:$16 sps:$4 sm:$0xff] (!%p251_p3)   ;;  %v2216_v3 = vld [vmem:[%s3003_s2 + $0x148] ss:$16 sps:$4 sm:$0xff] (!%p251_p3)   ;;  %796 = vmatprep.subr.bf16.mxu1 (!%p251_p3), %v2213_v1  ;;  %vm1207_vm2 = vcmask (!%p251_p3), 1046528  }
   0x8   : > { %v2217_v4 = vld [vmem:[%s3003_s2 + $0x164] ss:$16 sps:$4 sm:$0xff] (!%p251_p3)   ;;  %744 = vmatpush1.bf16.msra.mxu0 (!%p251_p3), %v2215_v2  ;;  %797 = vmatpush1.bf16.msra.mxu1 (!%p251_p3), %v2216_v3  ;;  %v2219_v5 = vld [vmem:[%s3003_s2 + $0x16c] ss:$16 sps:$4 sm:$0xff] (!%p251_p3)   ;;  %v2221_v6 = vld [vmem:[%s3003_s2 + $0x160] ss:$16 sps:$4 sm:$0xff] (!%p251_p3)  }
   0x9   : > { %745 = vmatprep.subr.bf16.mxu0 (!%p251_p3), %v2217_v4  ;;  %v2222_v7 = vld [vmem:[%s3003_s2 + $0x168] ss:$16 sps:$4 sm:$0xff] (!%p251_p3)   ;;  %798 = vmatprep.subr.bf16.mxu1 (!%p251_p3), %v2219_v5  ;;  %v2223_v8 = vld [vmem:[%s3003_s2 + $0x184] ss:$16 sps:$4 sm:$0xff] (!%p251_p3)   ;;  %v2225_v9 = vld [vmem:[%s3003_s2 + $0x18c] ss:$16 sps:$4 sm:$0xff] (!%p251_p3)  }
   0xa   : > { %v2227_v10 = vld [vmem:[%s3003_s2 + $0x180] ss:$16 sps:$4 sm:$0xff] (!%p251_p3)   ;;  %v2228_v11 = vld [vmem:[%s3003_s2 + $0x188] ss:$16 sps:$4 sm:$0xff] (!%p251_p3)   ;;  %v2229_v12 = vld [vmem:[%s3003_s2 + $0x1a4] ss:$16 sps:$4 sm:$0xff] (!%p251_p3)  }
   0xb   : > { %v2231_v13 = vld [vmem:[%s3003_s2 + $0x1ac] ss:$16 sps:$4 sm:$0xff] (!%p251_p3)   ;;  %v2233_v14 = vld [vmem:[%s3003_s2 + $0x1a0] ss:$16 sps:$4 sm:$0xff] (!%p251_p3)   ;;  %v2234_v15 = vld [vmem:[%s3003_s2 + $0x1a8] ss:$16 sps:$4 sm:$0xff] (!%p251_p3)  }
   0xc   : > { %746 = vmatpush1.bf16.msra.mxu0 (!%p251_p3), %v2221_v6  ;;  %799 = vmatpush1.bf16.msra.mxu1 (!%p251_p3), %v2222_v7  ;;  %v2235_v16 = vld [vmem:[%s3003_s2 + $0x1c4] ss:$16 sps:$4 sm:$0xff] (!%p251_p3)   ;;  %v2237_v17 = vld [vmem:[%s3003_s2 + $0x1cc] ss:$16 sps:$4 sm:$0xff] (!%p251_p3)   ;;  %v2239_v18 = vld [vmem:[%s3003_s2 + $0x1c0] ss:$16 sps:$4 sm:$0xff] (!%p251_p3)  }
   0xd   : > { %747 = vmatprep.subr.bf16.mxu0 (!%p251_p3), %v2223_v8  ;;  %800 = vmatprep.subr.bf16.mxu1 (!%p251_p3), %v2225_v9  ;;  %v2240_v19 = vld [vmem:[%s3003_s2 + $0x1c8] ss:$16 sps:$4 sm:$0xff] (!%p251_p3)   ;;  %v2241_v20 = vld [vmem:[%s3003_s2 + $0x1e4] ss:$16 sps:$4 sm:$0xff] (!%p251_p3)   ;;  %v2243_v21 = vld [vmem:[%s3003_s2 + $0x1ec] ss:$16 sps:$4 sm:$0xff] (!%p251_p3)  }
   0xe   : > { %s3012_s18 = smov (!%p317_p4, %s2435_s18), 1  ;;  %v2245_v22 = vld [vmem:[%s3003_s2 + $0x1e0] ss:$16 sps:$4 sm:$0xff]   ;;  %v2246_v23 = vld [vmem:[%s3003_s2 + $0x1e8] ss:$16 sps:$4 sm:$0xff]  }
   0xf   : > { %v2247_v24 = vld [vmem:[%s3003_s2 + $0x204] ss:$16 sps:$4 sm:$0xff]   ;;  %v2249_v25 = vld [vmem:[%s3003_s2 + $0x20c] ss:$16 sps:$4 sm:$0xff]   ;;  %s2184_s7 = smul.u32 48, %s3012_s18  ;;  %s2107_s30 = sshll.u32 %s3012_s18, 5 }
  0x10   : > { %748 = vmatpush1.bf16.msra.mxu0 %v2227_v10  ;;  %801 = vmatpush1.bf16.msra.mxu1 %v2228_v11  ;;  %v2251_v26 = vld [vmem:[%s3003_s2 + $0x200] ss:$16 sps:$4 sm:$0xff]   ;;  %v2252_v27 = vld [vmem:[%s3003_s2 + $0x208] ss:$16 sps:$4 sm:$0xff]   ;;  %v2253_v28 = vld [vmem:[%s3003_s2 + $0x224] ss:$16 sps:$4 sm:$0xff]   ;;  %s355_s9 = scalar_lea.vmem %s3005_s4, %s2107_s30 }
  0x11   : > { %749 = vmatprep.subr.bf16.mxu0 %v2229_v12  ;;  %802 = vmatprep.subr.bf16.mxu1 %v2231_v13  ;;  %v2255_v29 = vld [vmem:[%s3003_s2 + $0x22c] ss:$16 sps:$4 sm:$0xff]   ;;  %s325_s22 = scalar_lea.vmem %s3001_s0, %s2184_s7  ;;  %v2257_v30 = vld [vmem:[%s3003_s2 + $0x220] ss:$16 sps:$4 sm:$0xff]   ;;  %v2258_v31 = vld [vmem:[%s3003_s2 + $0x228] ss:$16 sps:$4 sm:$0xff]  }
  0x12   : > { %v365_v32 = vld [vmem:[%s325_s22] sm:$0xff]  ;;  %v366_v33 = vld [vmem:[%s325_s22 + $0x8] sm:$0xff]  ;;  %v367_v34 = vld [vmem:[%s325_s22 + $0x10] sm:$0xff]  ;;  %vm494_vm1 = vsmask.f32 7424  ;;  %s2106_s11 = sadd.s32 32, %s2184_s7 }
  0x13   : > { %v368_v35 = vld [vmem:[%s325_s22 + $0x18] sm:$0xff]  ;;  %v2271_v36 = vld [vmem:[%s325_s22 + $0x4] ss:$8 sps:$4 sm:$0xff]   ;;  %v2597_v38 = vcombine.low %v365_v32, %v366_v33  ;;  %v2263_v43 = vld [vmem:[%s3003_s2 + $0x240] ss:$16 sps:$4 sm:$0xff]   ;;  %s343_s25 = scalar_lea.vmem %s3002_s1, %s2106_s11  ;;  %s1948_s10 = sshll.u32 %s3012_s18, 3 }
  0x14   : > { %750 = vmatpush1.bf16.msra.mxu0 %v2233_v14  ;;  %803 = vmatpush1.bf16.msra.mxu1 %v2234_v15  ;;  %v2273_v37 = vld [vmem:[%s325_s22 + $0x14] ss:$8 sps:$4 sm:$0xff]   ;;  %v2599_v39 = vcombine.low %v367_v34, %v368_v35  ;;  %391 = vst.msk [vmem:[#allocation2 + $0x8] sm:$0xff] %vm390_vm0, %v2271_v36  ;;  %v2264_v44 = vld [vmem:[%s3003_s2 + $0x248] ss:$16 sps:$4 sm:$0xff]   ;;  %v394_v14 = vld [vmem:[%s343_s25] sm:$0xff]  ;;  %s363_s13 = scalar_lea.vmem %s3006_s5, %s1948_s10 }
  0x15   : > { %751 = vmatprep.subr.bf16.mxu0 %v2235_v16  ;;  %804 = vmatprep.subr.bf16.mxu1 %v2237_v17  ;;  %v2259_v40 = vld [vmem:[%s3003_s2 + $0x244] ss:$16 sps:$4 sm:$0xff]   ;;  %v2261_v41 = vld [vmem:[%s3003_s2 + $0x24c] ss:$16 sps:$4 sm:$0xff]   ;;  %393 = vst.msk [vmem:[#allocation2 + $0x18] sm:$0xff] %vm390_vm0, %v2273_v37  ;;  %389 = vst [vmem:[#allocation2] sm:$0xff] %v2597_v38 }
  0x16   : > { %v498_v42 = vshll.u32 %v2597_v38, 16  ;;  %v2265_v45 = vld [vmem:[%s3003_s2 + $0x264] ss:$16 sps:$4 sm:$0xff]   ;;  %v2267_v46 = vld [vmem:[%s3003_s2 + $0x26c] ss:$16 sps:$4 sm:$0xff]   ;;  %v496_v49 = vshrl.u32 %v2597_v38, 16 }
  0x17   : > { %v2269_v47 = vld [vmem:[%s3003_s2 + $0x260] ss:$16 sps:$4 sm:$0xff]   ;;  %v2270_v48 = vld [vmem:[%s3003_s2 + $0x268] ss:$16 sps:$4 sm:$0xff]   ;;  %v503_v51 = vshll.u32 %v2599_v39, 16 }
  0x18   : > { %752 = vmatpush1.bf16.msra.mxu0 %v2239_v18  ;;  %805 = vmatpush1.bf16.msra.mxu1 %v2240_v19  ;;  %v500_v50 = vrot.slane %v498_v42, 1  ;;  %v2277_v52 = vld [vmem:[%s3003_s2 + $0x4] ss:$16 sps:$4 sm:$0xff]   ;;  %v2280_v53 = vld [vmem:[%s3003_s2 + $0xc] ss:$16 sps:$4 sm:$0xff]   ;;  %v1209_v42 = vrot.slane %v2599_v39, 1 }
  0x19   : > { %753 = vmatprep.subr.bf16.mxu0 %v2241_v20  ;;  %806 = vmatprep.subr.bf16.mxu1 %v2243_v21  ;;  %v2644_v60 = vrot.slane %v503_v51, 1  ;;  %v2275_v0 = vld [vmem:[%s3003_s2] ss:$16 sps:$4 sm:$0xff]   ;;  %v2278_v1 = vld [vmem:[%s3003_s2 + $0x8] ss:$16 sps:$4 sm:$0xff]  }
  0x1a   : > { %v501_v59 = vor.u32 %v500_v50, %v496_v49  ;;  %v2283_v4 = vld [vmem:[%s3003_s2 + $0x24] ss:$16 sps:$4 sm:$0xff]   ;;  %v2286_v5 = vld [vmem:[%s3003_s2 + $0x2c] ss:$16 sps:$4 sm:$0xff]   ;;  %v2281_v6 = vld [vmem:[%s3003_s2 + $0x20] ss:$16 sps:$4 sm:$0xff]  }
  0x1b   : > { %v2637_v54 = vld [vmem:[#allocation2 + $0x8] sm:$0xff]  ;;  %v2289_v8 = vld [vmem:[%s3003_s2 + $0x44] ss:$16 sps:$4 sm:$0xff]   ;;  %v2287_v10 = vld [vmem:[%s3003_s2 + $0x40] ss:$16 sps:$4 sm:$0xff]  }
  0x1c   : > { %754 = vmatpush1.bf16.msra.mxu0 %v2245_v22  ;;  %807 = vmatpush1.bf16.msra.mxu1 %v2246_v23  ;;  %v2639_v55 = vld [vmem:[#allocation2 + $0x18] sm:$0xff]  ;;  %v508_v56 = vshrl.u32 %v2637_v54, 16  ;;  %v510_v57 = vshll.u32 %v2637_v54, 16  ;;  %v506_v2 = vsel %vm494_vm1, %v501_v59, %v2644_v60  ;;  %v2295_v12 = vld [vmem:[%s3003_s2 + $0x64] ss:$16 sps:$4 sm:$0xff]   ;;  %v395_v15 = vld [vmem:[%s343_s25 + $0x8] sm:$0xff] }
  0x1d   : > { %755 = vmatprep.subr.bf16.mxu0 %v2247_v24  ;;  %808 = vmatprep.subr.bf16.mxu1 %v2249_v25  ;;  %v515_v58 = vshll.u32 %v2639_v55, 16  ;;  %v2284_v7 = vld [vmem:[%s3003_s2 + $0x28] ss:$16 sps:$4 sm:$0xff]   ;;  %v2292_v9 = vld [vmem:[%s3003_s2 + $0x4c] ss:$16 sps:$4 sm:$0xff]   ;;  %v1953_v17 = vcombine.low %v394_v14, %v395_v15  ;;  %v527_v22 = vshrl.u32 %v2639_v55, 16 }
  0x1e   : > { %v512_v61 = vrot.slane %v510_v57, 1  ;;  %v2290_v11 = vld [vmem:[%s3003_s2 + $0x48] ss:$16 sps:$4 sm:$0xff]   ;;  %v2298_v13 = vld [vmem:[%s3003_s2 + $0x6c] ss:$16 sps:$4 sm:$0xff]   ;;  %v519_v25 = vshrl.u32 %v2599_v39, 16 }
  0x1f   : > { %v517_v62 = vrot.slane %v515_v58, 1  ;;  %v2323_v16 = vld [vmem:[%s343_s25 + $0x4] ss:$8 sps:$4 sm:$0xff]   ;;  %v2293_v18 = vld [vmem:[%s3003_s2 + $0x60] ss:$16 sps:$4 sm:$0xff]   ;;  %406 = vst [vmem:[#allocation2 + $0x20] sm:$0xff] %v1953_v17 }
  0x20   : > { %756 = vmatpush1.bf16.msra.mxu0 %v2251_v26  ;;  %809 = vmatpush1.bf16.msra.mxu1 %v2252_v27  ;;  %v513_v63 = vor.u32 %v512_v61, %v508_v56  ;;  %407 = vst.msk [vmem:[#allocation2 + $0x28] sm:$0xff] %vm390_vm0, %v2323_v16  ;;  %v2296_v19 = vld [vmem:[%s3003_s2 + $0x68] ss:$16 sps:$4 sm:$0xff]   ;;  %v2301_v20 = vld [vmem:[%s3003_s2 + $0x84] ss:$16 sps:$4 sm:$0xff]   ;;  %v521_v35 = vor.u32 %v519_v25, %v2644_v60 }
  0x21   : > { %757 = vmatprep.subr.bf16.mxu0 %v2253_v28  ;;  %810 = vmatprep.subr.bf16.mxu1 %v2255_v29  ;;  %v2304_v21 = vld [vmem:[%s3003_s2 + $0x8c] ss:$16 sps:$4 sm:$0xff]   ;;  %v2299_v23 = vld [vmem:[%s3003_s2 + $0x80] ss:$16 sps:$4 sm:$0xff]   ;;  %v2302_v24 = vld [vmem:[%s3003_s2 + $0x88] ss:$16 sps:$4 sm:$0xff]   ;;  %v529_v29 = vor.u32 %v527_v22, %v517_v62 }
  0x22   : > { %v518_v3 = vsel %vm494_vm1, %v513_v63, %v517_v62  ;;  %v2307_v26 = vld [vmem:[%s3003_s2 + $0xa4] ss:$16 sps:$4 sm:$0xff]   ;;  %v2310_v27 = vld [vmem:[%s3003_s2 + $0xac] ss:$16 sps:$4 sm:$0xff]   ;;  %v2308_v33 = vld [vmem:[%s3003_s2 + $0xa8] ss:$16 sps:$4 sm:$0xff]  }
  0x23   : > { %1995 = vmatprep.mubr.msk.bf16.mxu0 %vm390_vm0, %v518_v3  ;;  %1997 = vmatprep.mubr.msk.bf16.mxu1 %vm390_vm0, %v518_v3  ;;  %v2313_v34 = vld [vmem:[%s3003_s2 + $0xc4] ss:$16 sps:$4 sm:$0xff]   ;;  %v2316_v37 = vld [vmem:[%s3003_s2 + $0xcc] ss:$16 sps:$4 sm:$0xff]   ;;  %v2317_v51 = vld [vmem:[%s3003_s2 + $0xe0] ss:$16 sps:$4 sm:$0xff]  }
  0x24   : > { %758 = vmatpush1.bf16.msra.mxu0 %v2257_v30  ;;  %811 = vmatpush1.bf16.msra.mxu1 %v2258_v31  ;;  %v2305_v30 = vld [vmem:[%s3003_s2 + $0xa0] ss:$16 sps:$4 sm:$0xff]   ;;  %v2322_v50 = vld [vmem:[%s3003_s2 + $0xec] ss:$16 sps:$4 sm:$0xff]   ;;  %v2328_v58 = vld [vmem:[%s3003_s2 + $0x108] ss:$16 sps:$4 sm:$0xff]  }
  0x25   : > { %759 = vmatprep.subr.bf16.mxu0 %v2259_v40  ;;  %812 = vmatprep.subr.bf16.mxu1 %v2261_v41  ;;  %v2330_v56 = vld [vmem:[%s3003_s2 + $0x10c] ss:$16 sps:$4 sm:$0xff]   ;;  %v2325_v57 = vld [vmem:[%s3003_s2 + $0x100] ss:$16 sps:$4 sm:$0xff]   ;;  %v2333_v59 = vld [vmem:[%s3003_s2 + $0x124] ss:$16 sps:$4 sm:$0xff]  }
  0x26   : > { %v452_v32 = vld [vmem:[#allocation2 + $0x20] sm:$0x1]  ;;  %v2334_v61 = vld [vmem:[%s3003_s2 + $0x128] ss:$16 sps:$4 sm:$0xff]   ;;  %v2339_v62 = vld [vmem:[%s3003_s2 + $0x284] ss:$16 sps:$4 sm:$0xff]  }
  0x27   : > { %v2719_v28 = vld [vmem:[#allocation2 + $0x28] sm:$0x1]  ;;  %v523_v36 = vshll.u32 %v452_v32, 16  ;;  %v2331_v60 = vld [vmem:[%s3003_s2 + $0x120] ss:$16 sps:$4 sm:$0xff]  }
  0x28   : > { %760 = vmatpush1.bf16.msra.mxu0 %v2263_v43  ;;  %813 = vmatpush1.bf16.msra.mxu1 %v2264_v44  ;;  %v531_v31 = vshll.u32 %v2719_v28, 16  ;;  %v1214_v43 = vrot.slane %v452_v32, 1  ;;  %v2311_v44 = vld [vmem:[%s3003_s2 + $0xc0] ss:$16 sps:$4 sm:$0xff]   ;;  %v2342_v63 = vld [vmem:[%s3003_s2 + $0x28c] ss:$16 sps:$4 sm:$0xff]  }
  0x29   : > { %761 = vmatprep.subr.bf16.mxu0 %v2265_v45  ;;  %814 = vmatprep.subr.bf16.mxu1 %v2267_v46  ;;  %v525_v41 = vrot.slane %v523_v36, 1  ;;  %v2314_v46 = vld [vmem:[%s3003_s2 + $0xc8] ss:$16 sps:$4 sm:$0xff]   ;;  %v2348_v3 = vld [vmem:[%s3003_s2 + $0x2ac] ss:$16 sps:$4 sm:$0xff]  }
  0x2a   : > { %v533_v40 = vrot.slane %v531_v31, 1  ;;  %v2750_v49 = vsel %vm1207_vm2, %v1209_v42, %v1214_v43  ;;  %v2355_v14 = vld [vmem:[%s3003_s2 + $0x2e0] ss:$16 sps:$4 sm:$0xff]   ;;  %v2358_v15 = vld [vmem:[%s3003_s2 + $0x2e8] ss:$16 sps:$4 sm:$0xff]  }
  0x2b   : > { %v2363_v17 = vld [vmem:[%s3003_s2 + $0x304] ss:$16 sps:$4 sm:$0xff]   ;;  %v2372_v22 = vld [vmem:[%s3003_s2 + $0x32c] ss:$16 sps:$4 sm:$0xff]   ;;  %v2379_v32 = vld [vmem:[%s3003_s2 + $0x360] ss:$16 sps:$4 sm:$0xff]  }
  0x2c   : > { %762 = vmatpush1.bf16.msra.mxu0 %v2269_v47  ;;  %815 = vmatpush1.bf16.msra.mxu1 %v2270_v48  ;;  %v534_v45 = vsel %vm494_vm1, %v529_v29, %v533_v40  ;;  %v2319_v47 = vld [vmem:[%s3003_s2 + $0xe4] ss:$16 sps:$4 sm:$0xff]   ;;  %v526_v48 = vsel %vm494_vm1, %v521_v35, %v525_v41  ;;  %v2376_v29 = vld [vmem:[%s3003_s2 + $0x348] ss:$16 sps:$4 sm:$0xff]   ;;  %v2384_v31 = vld [vmem:[%s3003_s2 + $0x36c] ss:$16 sps:$4 sm:$0xff]  }
  0x2d   : > { %1053 = vmatprep.subr.bf16.mxu0 %v2277_v52  ;;  %1106 = vmatprep.subr.bf16.mxu1 %v2280_v53  ;;  %v2320_v52 = vld [vmem:[%s3003_s2 + $0xe8] ss:$16 sps:$4 sm:$0xff]   ;;  %v2327_v53 = vld [vmem:[%s3003_s2 + $0x104] ss:$16 sps:$4 sm:$0xff]   ;;  %v2390_v35 = vld [vmem:[%s3003_s2 + $0x38c] ss:$16 sps:$4 sm:$0xff]  }
  0x2e   : > { %v2375_v25 = vld [vmem:[%s3003_s2 + $0x344] ss:$16 sps:$4 sm:$0xff]   ;;  %v2385_v36 = vld [vmem:[%s3003_s2 + $0x380] ss:$16 sps:$4 sm:$0xff]   ;;  %v2396_v41 = vld [vmem:[%s3003_s2 + $0x3ac] ss:$16 sps:$4 sm:$0xff]  }
  0x2f   : > { %776 = vmatmul.mubr.bf16.vlgmr.msra.gmra.mrb[0].mxu0 %v506_v2  ;;  %829 = vmatmul.mubr.bf16.vlgmr.msra.gmra.mrb[0].mxu1 %v506_v2  ;;  %v2345_v2 = vld [vmem:[%s3003_s2 + $0x2a4] ss:$16 sps:$4 sm:$0xff]  }
  0x30   : > { %1054 = vmatpush1.bf16.msra.mxu0 %v2275_v0  ;;  %1107 = vmatpush1.bf16.msra.mxu1 %v2278_v1  ;;  %v2337_v0 = vld [vmem:[%s3003_s2 + $0x280] ss:$16 sps:$4 sm:$0xff]   ;;  %v2340_v1 = vld [vmem:[%s3003_s2 + $0x288] ss:$16 sps:$4 sm:$0xff]   ;;  %v2393_v40 = vld [vmem:[%s3003_s2 + $0x3a4] ss:$16 sps:$4 sm:$0xff]  }
  0x31   : > { %1055 = vmatprep.subr.bf16.mxu0 %v2283_v4  ;;  %1108 = vmatprep.subr.bf16.mxu1 %v2286_v5  ;;  %v2343_v4 = vld [vmem:[%s3003_s2 + $0x2a0] ss:$16 sps:$4 sm:$0xff]   ;;  %v2346_v5 = vld [vmem:[%s3003_s2 + $0x2a8] ss:$16 sps:$4 sm:$0xff]  }
  0x32   : > { %1996 = vmatprep.mubr.msk.bf16.mxu0 %vm390_vm0, %v534_v45  ;;  %1998 = vmatprep.mubr.msk.bf16.mxu1 %vm390_vm0, %v534_v45  ;;  %v1159_v43 = vld [vmem:[#allocation2] sm:$0xfe]  ;;  %v2394_v45 = vld [vmem:[%s3003_s2 + $0x3a8] ss:$16 sps:$4 sm:$0xff]  }
  0x34   : > { %1056 = vmatpush1.bf16.msra.mxu0 %v2281_v6  ;;  %1109 = vmatpush1.bf16.msra.mxu1 %v2284_v7  ;;  %v2351_v6 = vld [vmem:[%s3003_s2 + $0x2c4] ss:$16 sps:$4 sm:$0xff]   ;;  %v1160_v7 = vld [vmem:[#allocation2 + $0x8] sm:$0xfe] }
  0x35   : > { %1057 = vmatprep.subr.bf16.mxu0 %v2289_v8  ;;  %1110 = vmatprep.subr.bf16.mxu1 %v2292_v9  ;;  %v2354_v8 = vld [vmem:[%s3003_s2 + $0x2cc] ss:$16 sps:$4 sm:$0xff]   ;;  %v2349_v9 = vld [vmem:[%s3003_s2 + $0x2c0] ss:$16 sps:$4 sm:$0xff]  }
  0x37   : > { %786 = vmatmul.mubr.bf16.gmra.mrb[4].mxu0 %v526_v48  ;;  %839 = vmatmul.mubr.bf16.gmra.mrb[4].mxu1 %v526_v48  ;;  %v2397_v48 = vld [vmem:[%s3004_s3 + $0x40] sm:$0xff]  }
  0x38   : > { %1058 = vmatpush1.bf16.msra.mxu0 %v2287_v10  ;;  %1111 = vmatpush1.bf16.msra.mxu1 %v2290_v11  ;;  %v1211_v10 = vrot.slane %v1160_v7, 1  ;;  %v1212_v11 = vrot.slane %v2639_v55, 1 }
  0x39   : > { %1059 = vmatprep.subr.bf16.mxu0 %v2295_v12  ;;  %1112 = vmatprep.subr.bf16.mxu1 %v2298_v13  ;;  %v2357_v12 = vld [vmem:[%s3003_s2 + $0x2e4] ss:$16 sps:$4 sm:$0xff]   ;;  %v2360_v13 = vld [vmem:[%s3003_s2 + $0x2ec] ss:$16 sps:$4 sm:$0xff]  }
  0x3a   : > { %2039 = vmatprep.mubr.msk.bf16.mxu0 %vm390_vm0, %v2637_v54  ;;  %2041 = vmatprep.mubr.msk.bf16.mxu1 %vm390_vm0, %v2637_v54  ;;  %v2336_v54 = vld [vmem:[%s3003_s2 + $0x12c] ss:$16 sps:$4 sm:$0xff]   ;;  %v1213_v16 = vsel %vm1207_vm2, %v1211_v10, %v1212_v11 }
  0x3c   : > { %1060 = vmatpush1.bf16.msra.mxu0 %v2293_v18  ;;  %1113 = vmatpush1.bf16.msra.mxu1 %v2296_v19  ;;  %v2366_v18 = vld [vmem:[%s3003_s2 + $0x30c] ss:$16 sps:$4 sm:$0xff]   ;;  %v2361_v19 = vld [vmem:[%s3003_s2 + $0x300] ss:$16 sps:$4 sm:$0xff]  }
  0x3d   : > { %1061 = vmatprep.subr.bf16.mxu0 %v2301_v20  ;;  %1114 = vmatprep.subr.bf16.mxu1 %v2304_v21  ;;  %v2364_v20 = vld [vmem:[%s3003_s2 + $0x308] ss:$16 sps:$4 sm:$0xff]   ;;  %v2369_v21 = vld [vmem:[%s3003_s2 + $0x324] ss:$16 sps:$4 sm:$0xff]  }
  0x40   : > { %1062 = vmatpush1.bf16.msra.mxu0 %v2299_v23  ;;  %1115 = vmatpush1.bf16.msra.mxu1 %v2302_v24  ;;  %v2367_v23 = vld [vmem:[%s3003_s2 + $0x320] ss:$16 sps:$4 sm:$0xff]   ;;  %v2370_v24 = vld [vmem:[%s3003_s2 + $0x328] ss:$16 sps:$4 sm:$0xff]  }
  0x41   : > { %1063 = vmatprep.subr.bf16.mxu0 %v2307_v26  ;;  %1116 = vmatprep.subr.bf16.mxu1 %v2310_v27  ;;  %v2378_v26 = vld [vmem:[%s3003_s2 + $0x34c] ss:$16 sps:$4 sm:$0xff]   ;;  %v2373_v27 = vld [vmem:[%s3003_s2 + $0x340] ss:$16 sps:$4 sm:$0xff]  }
  0x44   : > { %1064 = vmatpush1.bf16.msra.mxu0 %v2305_v30  ;;  %1117 = vmatpush1.bf16.msra.mxu1 %v2308_v33  ;;  %v2381_v30 = vld [vmem:[%s3003_s2 + $0x364] ss:$16 sps:$4 sm:$0xff]   ;;  %v2382_v33 = vld [vmem:[%s3003_s2 + $0x368] ss:$16 sps:$4 sm:$0xff]  }
  0x45   : > { %1065 = vmatprep.subr.bf16.mxu0 %v2313_v34  ;;  %1118 = vmatprep.subr.bf16.mxu1 %v2316_v37  ;;  %v2387_v34 = vld [vmem:[%s3003_s2 + $0x384] ss:$16 sps:$4 sm:$0xff]   ;;  %v2388_v37 = vld [vmem:[%s3003_s2 + $0x388] ss:$16 sps:$4 sm:$0xff]  }
  0x48   : > { %1066 = vmatpush1.bf16.msra.mxu0 %v2311_v44  ;;  %1119 = vmatpush1.bf16.msra.mxu1 %v2314_v46  ;;  %v2391_v44 = vld [vmem:[%s3003_s2 + $0x3a0] ss:$16 sps:$4 sm:$0xff]   ;;  %v1208_v46 = vrot.slane %v1159_v43, 1 }
  0x49   : > { %1067 = vmatprep.subr.bf16.mxu0 %v2319_v47  ;;  %1120 = vmatprep.subr.bf16.mxu1 %v2322_v50  ;;  %v1216_v47 = vrot.slane %v2719_v28, 1  ;;  %v2399_v28 = vld [vmem:[%s3004_s3 + $0x48] sm:$0xff]  }
  0x4a   : > { %v1210_v50 = vsel %vm1207_vm2, %v1208_v46, %v1209_v42  ;;  %v2402_v42 = vld [vmem:[%s3004_s3 + $0x10] sm:$0xff]  }
  0x4c   : > { %1068 = vmatpush1.bf16.msra.mxu0 %v2317_v51  ;;  %1121 = vmatpush1.bf16.msra.mxu1 %v2320_v52  ;;  %v1217_v51 = vsel %vm1207_vm2, %v1212_v11, %v1216_v47  ;;  %v2398_v52 = vld [vmem:[%s3004_s3] sm:$0xff]  }
  0x4d   : > { %1069 = vmatprep.subr.bf16.mxu0 %v2327_v53  ;;  %1122 = vmatprep.subr.bf16.mxu1 %v2330_v56  ;;  %v2403_v53 = vld [vmem:[%s3004_s3 + $0x58] sm:$0xff]  }
  0x4e   : > { %v2404_v56 = vld [vmem:[%s3004_s3 + $0x18] sm:$0xff]  }
  0x50   : > { %1070 = vmatpush1.bf16.msra.mxu0 %v2325_v57  ;;  %1123 = vmatpush1.bf16.msra.mxu1 %v2328_v58  ;;  %v2405_v57 = vld [vmem:[%s3004_s3 + $0x60] sm:$0xff]  }
  0x51   : > { %1071 = vmatprep.subr.bf16.mxu0 %v2333_v59  ;;  %1124 = vmatprep.subr.bf16.mxu1 %v2336_v54  ;;  %v2406_v58 = vld [vmem:[%s3004_s3 + $0x20] sm:$0xff]   ;;  %v2408_v59 = vld [vmem:[%s3004_s3 + $0x28] sm:$0xff]   ;;  %v2409_v54 = vld [vmem:[%s3004_s3 + $0x70] sm:$0xff]  }
  0x54   : > { %1072 = vmatpush1.bf16.msra.mxu0 %v2331_v60  ;;  %1125 = vmatpush1.bf16.msra.mxu1 %v2334_v61  ;;  %v2410_v60 = vld [vmem:[%s3004_s3 + $0x30] sm:$0xff]   ;;  %v2411_v61 = vld [vmem:[%s3004_s3 + $0x78] sm:$0xff]  }
  0x55   : > { %1426 = vmatprep.subr.bf16.mxu0 %v2339_v62  ;;  %1479 = vmatprep.subr.bf16.mxu1 %v2342_v63  ;;  %v2412_v62 = vld [vmem:[%s3004_s3 + $0x38] sm:$0xff]  }
  0x57   : > { %1086 = vmatmul.mubr.bf16.vlgmr.msra.gmra.mrb[0].mxu0 %v2597_v38  ;;  %1139 = vmatmul.mubr.bf16.vlgmr.msra.gmra.mrb[0].mxu1 %v2597_v38  ;;  %v2352_v38 = vld [vmem:[%s3003_s2 + $0x2c8] ss:$16 sps:$4 sm:$0xff]  }
  0x58   : > { %1427 = vmatpush1.bf16.msra.mxu0 %v2337_v0  ;;  %1480 = vmatpush1.bf16.msra.mxu1 %v2340_v1 }
  0x59   : > { %1428 = vmatprep.subr.bf16.mxu0 %v2345_v2  ;;  %1481 = vmatprep.subr.bf16.mxu1 %v2348_v3 }
  0x5a   : > { %2040 = vmatprep.mubr.msk.bf16.mxu0 %vm390_vm0, %v2639_v55  ;;  %2042 = vmatprep.mubr.msk.bf16.mxu1 %vm390_vm0, %v2639_v55  ;;  %v2401_v55 = vld [vmem:[%s3004_s3 + $0x50] sm:$0xff]  }
  0x5c   : > { %1429 = vmatpush1.bf16.msra.mxu0 %v2343_v4  ;;  %1482 = vmatpush1.bf16.msra.mxu1 %v2346_v5 }
  0x5d   : > { %1430 = vmatprep.subr.bf16.mxu0 %v2351_v6  ;;  %1483 = vmatprep.subr.bf16.mxu1 %v2354_v8 }
  0x5f   : > { %1096 = vmatmul.mubr.bf16.gmra.mrb[4].mxu0 %v2599_v39  ;;  %1149 = vmatmul.mubr.bf16.gmra.mrb[4].mxu1 %v2599_v39  ;;  %v2400_v39 = vld [vmem:[%s3004_s3 + $0x8] sm:$0xff]  }
  0x60   : > { %1431 = vmatpush1.bf16.msra.mxu0 %v2349_v9  ;;  %1484 = vmatpush1.bf16.msra.mxu1 %v2352_v38 }
  0x61   : > { %1432 = vmatprep.subr.bf16.mxu0 %v2357_v12  ;;  %1485 = vmatprep.subr.bf16.mxu1 %v2360_v13 }
  0x62   : > { %2083 = vmatprep.mubr.msk.bf16.mxu0 %vm390_vm0, %v1213_v16  ;;  %2085 = vmatprep.mubr.msk.bf16.mxu1 %vm390_vm0, %v1213_v16 }
  0x64   : > { %1433 = vmatpush1.bf16.msra.mxu0 %v2355_v14  ;;  %1486 = vmatpush1.bf16.msra.mxu1 %v2358_v15 }
  0x65   : > { %1434 = vmatprep.subr.bf16.mxu0 %v2363_v17  ;;  %1487 = vmatprep.subr.bf16.mxu1 %v2366_v18 }
  0x68   : > { %1435 = vmatpush1.bf16.msra.mxu0 %v2361_v19  ;;  %1488 = vmatpush1.bf16.msra.mxu1 %v2364_v20 }
  0x69   : > { %1436 = vmatprep.subr.bf16.mxu0 %v2369_v21  ;;  %1489 = vmatprep.subr.bf16.mxu1 %v2372_v22 }
  0x6c   : > { %1437 = vmatpush1.bf16.msra.mxu0 %v2367_v23  ;;  %1490 = vmatpush1.bf16.msra.mxu1 %v2370_v24 }
  0x6d   : > { %1438 = vmatprep.subr.bf16.mxu0 %v2375_v25  ;;  %1491 = vmatprep.subr.bf16.mxu1 %v2378_v26 }
  0x70   : > { %1439 = vmatpush1.bf16.msra.mxu0 %v2373_v27  ;;  %1492 = vmatpush1.bf16.msra.mxu1 %v2376_v29 }
  0x71   : > { %1440 = vmatprep.subr.bf16.mxu0 %v2381_v30  ;;  %1493 = vmatprep.subr.bf16.mxu1 %v2384_v31 }
  0x74   : > { %1441 = vmatpush1.bf16.msra.mxu0 %v2379_v32  ;;  %1494 = vmatpush1.bf16.msra.mxu1 %v2382_v33 }
  0x75   : > { %1442 = vmatprep.subr.bf16.mxu0 %v2387_v34  ;;  %1495 = vmatprep.subr.bf16.mxu1 %v2390_v35 }
  0x78   : > { %1443 = vmatpush1.bf16.msra.mxu0 %v2385_v36  ;;  %1496 = vmatpush1.bf16.msra.mxu1 %v2388_v37 }
  0x79   : > { %1444 = vmatprep.subr.bf16.mxu0 %v2393_v40  ;;  %1497 = vmatprep.subr.bf16.mxu1 %v2396_v41 }
  0x7c   : > { %1445 = vmatpush1.bf16.msra.mxu0 %v2391_v44  ;;  %1498 = vmatpush1.bf16.msra.mxu1 %v2394_v45 }
  0x7d   : > { %2108 = vmatprep.subr.bf16.mxu0 %v2397_v48  ;;  %2136 = vmatprep.subr.bf16.mxu1 %v2397_v48 }
  0x7f   : > { %1459 = vmatmul.mubr.bf16.vlgmr.msra.gmra.mrb[0].mxu0 %v1210_v50  ;;  %1512 = vmatmul.mubr.bf16.vlgmr.msra.gmra.mrb[0].mxu1 %v1210_v50 }
  0x80   : > { %2084 = vmatprep.mubr.msk.bf16.mxu0 %vm390_vm0, %v1217_v51  ;;  %2086 = vmatprep.mubr.msk.bf16.mxu1 %vm390_vm0, %v1217_v51 }
  0x81   : > { %2109 = vmatpush3.bf16.msra.mxu0 %v2398_v52  ;;  %2144 = vmatpush3.bf16.msra.mxu1 %v2398_v52 }
  0x82   : > { %2110 = vmatprep.subr.bf16.mxu0 %v2399_v28  ;;  %2137 = vmatprep.subr.bf16.mxu1 %v2399_v28 }
  0x85   : > { %2111 = vmatpush3.bf16.msra.mxu0 %v2400_v39  ;;  %2145 = vmatpush3.bf16.msra.mxu1 %v2400_v39 }
  0x86   : > { %2112 = vmatprep.subr.bf16.mxu0 %v2401_v55  ;;  %2138 = vmatprep.subr.bf16.mxu1 %v2401_v55 }
  0x87   : > { %1469 = vmatmul.mubr.bf16.gmra.mrb[4].mxu0 %v2750_v49  ;;  %1522 = vmatmul.mubr.bf16.gmra.mrb[4].mxu1 %v2750_v49  ;;  %v2407_v49 = vld [vmem:[%s3004_s3 + $0x68] sm:$0xff]  }
  0x89   : > { %2113 = vmatpush3.bf16.msra.mxu0 %v2402_v42  ;;  %2146 = vmatpush3.bf16.msra.mxu1 %v2402_v42 }
  0x8a   : > { %2114 = vmatprep.subr.bf16.mxu0 %v2403_v53  ;;  %2139 = vmatprep.subr.bf16.mxu1 %v2403_v53 }
  0x8d   : > { %2115 = vmatpush3.bf16.msra.mxu0 %v2404_v56  ;;  %2147 = vmatpush3.bf16.msra.mxu1 %v2404_v56 }
  0x8e   : > { %2116 = vmatprep.subr.bf16.mxu0 %v2405_v57  ;;  %2140 = vmatprep.subr.bf16.mxu1 %v2405_v57 }
  0x91   : > { %2117 = vmatpush3.bf16.msra.mxu0 %v2406_v58  ;;  %2148 = vmatpush3.bf16.msra.mxu1 %v2406_v58 }
  0x92   : > { %2118 = vmatprep.subr.bf16.mxu0 %v2407_v49  ;;  %2141 = vmatprep.subr.bf16.mxu1 %v2407_v49 }
  0x95   : > { %2119 = vmatpush3.bf16.msra.mxu0 %v2408_v59  ;;  %2149 = vmatpush3.bf16.msra.mxu1 %v2408_v59 }
  0x96   : > { %2120 = vmatprep.subr.bf16.mxu0 %v2409_v54  ;;  %2142 = vmatprep.subr.bf16.mxu1 %v2409_v54 }
  0x99   : > { %2121 = vmatpush3.bf16.msra.mxu0 %v2410_v60  ;;  %2150 = vmatpush3.bf16.msra.mxu1 %v2410_v60 }
  0x9a   : > { %2122 = vmatprep.subr.bf16.mxu0 %v2411_v61  ;;  %2143 = vmatprep.subr.bf16.mxu1 %v2411_v61 }
  0x9d   : > { %2123 = vmatpush3.bf16.msra.mxu0 %v2412_v62  ;;  %2151 = vmatpush3.bf16.msra.mxu1 %v2412_v62 }
 0x152   : > { %v1460_v63 = vpop.f32.mrb[0].mxu0  ;;  %v1513_v0 = vpop.f32.mrb[0].mxu1 }
 0x153   : > { %v1548_v1 = vmul.f32 %v1460_v63, %v1460_v63  ;;  %v1556_v2 = vmul.f32 %v1513_v0, %v1513_v0  ;;  %v1462_v3 = vpop.f32.mrb[1].mxu0  ;;  %v1515_v4 = vpop.f32.mrb[1].mxu1 }
 0x154   : > { %v1549_v5 = vmul.f32 %v1462_v3, %v1462_v3  ;;  %v1557_v6 = vmul.f32 %v1515_v4, %v1515_v4  ;;  %v1464_v7 = vpop.f32.mrb[2].mxu0  ;;  %v1517_v8 = vpop.f32.mrb[2].mxu1 }
 0x155   : > { %v1564_v9 = vadd.f32 %v1556_v2, %v1548_v1  ;;  %v1550_v38 = vmul.f32 %v1464_v7, %v1464_v7  ;;  %v1558_v10 = vmul.f32 %v1517_v8, %v1517_v8  ;;  %v1466_v11 = vpop.f32.mrb[3].mxu0  ;;  %v1519_v12 = vpop.f32.mrb[3].mxu1 }
 0x156   : > { %v1565_v13 = vadd.f32 %v1557_v6, %v1549_v5  ;;  %v1551_v14 = vmul.f32 %v1466_v11, %v1466_v11  ;;  %v1559_v15 = vmul.f32 %v1519_v12, %v1519_v12 }
 0x157   : > { %v1566_v16 = vadd.f32 %v1558_v10, %v1550_v38 }
 0x158   : > { %v1567_v17 = vadd.f32 %v1559_v15, %v1551_v14 }
 0x159   : > { %v1572_v18 = vpack.c.bf16 %v1566_v16, %v1564_v9 }
 0x15a   : > { %v1470_v19 = vpop.f32.mrb[4].mxu0  ;;  %v1523_v20 = vpop.f32.mrb[4].mxu1  ;;  %v1573_v21 = vpack.c.bf16 %v1567_v17, %v1565_v13 }
 0x15b   : > { %v1552_v22 = vmul.f32 %v1470_v19, %v1470_v19  ;;  %v1560_v23 = vmul.f32 %v1523_v20, %v1523_v20  ;;  %v1472_v24 = vpop.f32.mrb[5].mxu0  ;;  %v1525_v25 = vpop.f32.mrb[5].mxu1 }
 0x15c   : > { %v1553_v26 = vmul.f32 %v1472_v24, %v1472_v24  ;;  %v1561_v27 = vmul.f32 %v1525_v25, %v1525_v25  ;;  %v1474_v29 = vpop.f32.mrb[6].mxu0  ;;  %v1527_v30 = vpop.f32.mrb[6].mxu1  ;;  %1736 = vmatprep.mubr.bf16.mxu0 %v1573_v21 }
 0x15d   : > { %v1568_v31 = vadd.f32 %v1560_v23, %v1552_v22  ;;  %v1554_v32 = vmul.f32 %v1474_v29, %v1474_v29  ;;  %v1562_v33 = vmul.f32 %v1527_v30, %v1527_v30  ;;  %v1476_v34 = vpop.f32.mrb[7].mxu0  ;;  %v1529_v35 = vpop.f32.mrb[7].mxu1  ;;  %1737 = vmatmul.mubr.bf16.vlgmr.msra.gmra.mrb[8].mxu0 %v1572_v18 }
 0x15e   : > { %v1569_v36 = vadd.f32 %v1561_v27, %v1553_v26  ;;  %v1555_v37 = vmul.f32 %v1476_v34, %v1476_v34  ;;  %v1563_v40 = vmul.f32 %v1529_v35, %v1529_v35 }
 0x15f   : > { %v1570_v41 = vadd.f32 %v1562_v33, %v1554_v32 }
 0x160   : > { %v1571_v43 = vadd.f32 %v1563_v40, %v1555_v37 }
 0x161   : > { %v1574_v44 = vpack.c.bf16 %v1570_v41, %v1568_v31 }
 0x162   : > { %v1575_v45 = vpack.c.bf16 %v1571_v43, %v1569_v36 }
 0x164   : > { %1744 = vmatprep.mubr.bf16.mxu1 %v1575_v45 }
 0x165   : > { %1745 = vmatmul.mubr.bf16.vlgmr.msra.gmra.mrb[8].mxu1 %v1574_v44 }
 0x230   : > { %v2124_v46 = vpop.f32.mrb[8].mxu0 }
 0x231   : > { %v2125_v47 = vpop.f32.mrb[9].mxu0 }
 0x232   : > { %v2126_v48 = vadd.f32 %v2125_v47, %v2124_v46  ;;  %v2127_v50 = vpop.f32.mrb[10].mxu0 }
 0x233   : > { %v2128_v51 = vpop.f32.mrb[11].mxu0 }
 0x234   : > { %v1753_v52 = vmax.f32 %v2126_v48, 1e-10  ;;  %v2129_v28 = vadd.f32 %v2128_v51, %v2127_v50 }
 0x236   : > { %2413 = vlog2.f32 %v1753_v52  ;;  %v1754_v39 = vmax.f32 %v2129_v28, 1e-10 }
 0x238   : > { %2415 = vlog2.f32 %v1754_v39  ;;  %v2130_v55 = vpop.f32.mrb[8].mxu1 }
 0x239   : > { %v2131_v42 = vpop.f32.mrb[9].mxu1 }
 0x23a   : > { %v2132_v53 = vadd.f32 %v2131_v42, %v2130_v55  ;;  %v2133_v56 = vpop.f32.mrb[10].mxu1 }
 0x23b   : > { %v2134_v57 = vpop.f32.mrb[11].mxu1 }
 0x23c   : > { %v1755_v58 = vmax.f32 %v2132_v53, 1e-10  ;;  %v2135_v49 = vadd.f32 %v2134_v57, %v2133_v56 }
 0x23e   : > { %2417 = vlog2.f32 %v1755_v58  ;;  %v1756_v59 = vmax.f32 %v2135_v49, 1e-10 }
 0x240   : > { %v2414_v54 = vpop.eup %2413  ;;  %2419 = vlog2.f32 %v1756_v59 }
 0x241   : > { %v1758_v60 = vmul.f32 0.6931472, %v2414_v54 }
 0x242   : > { %v2416_v61 = vpop.eup %2415 }
 0x243   : > { %v1765_v62 = vmul.f32 0.4342945, %v1758_v60  ;;  %v1760_v63 = vmul.f32 0.6931472, %v2416_v61 }
 0x245   : > { %v1769_v0 = vmul.f32 10.0, %v1765_v62  ;;  %v1766_v1 = vmul.f32 0.4342945, %v1760_v63 }
 0x247   : > { %1773 = vst [vmem:[%s355_s9] sm:$0xff] %v1769_v0  ;;  %v1770_v2 = vmul.f32 10.0, %v1766_v1 }
 0x248   : > { %v2418_v3 = vpop.eup %2417 }
 0x249   : > { %1774 = vst [vmem:[%s355_s9 + $0x8] sm:$0xff] %v1770_v2  ;;  %v1777_v4 = vmax.f32 %v1769_v0, %v1770_v2  ;;  %v1762_v5 = vmul.f32 0.6931472, %v2418_v3 }
 0x24a   : > { %v2420_v6 = vpop.eup %2419 }
 0x24b   : > { %v1767_v7 = vmul.f32 0.4342945, %v1762_v5  ;;  %v1764_v8 = vmul.f32 0.6931472, %v2420_v6 }
 0x24d   : > { %v1771_v9 = vmul.f32 10.0, %v1767_v7  ;;  %v1768_v38 = vmul.f32 0.4342945, %v1764_v8 }
 0x24f   : > { %1775 = vst [vmem:[%s355_s9 + $0x10] sm:$0xff] %v1771_v9  ;;  %v1772_v10 = vmul.f32 10.0, %v1768_v38 }
 0x251   : > { %1776 = vst [vmem:[%s355_s9 + $0x18] sm:$0xff] %v1772_v10  ;;  %v1778_v11 = vmax.f32 %v1771_v9, %v1772_v10 }
 0x253   : > { %v1779_v12 = vmax.f32 %v1777_v4, %v1778_v11 }
 0x255   : > { %v1780_v13 = vrot.slane %v1779_v12, 4 }
 0x257   : > { %v1781_v14 = vmax.f32 %v1779_v12, %v1780_v13 }
 0x259   : > { %v1782_v15 = vrot.slane %v1781_v14, 2 }
 0x25b   : > { %v1783_v16 = vmax.f32 %v1781_v14, %v1782_v15 }
 0x25d   : > { %v1784_v17 = vrot.slane %v1783_v16, 1 }
 0x25f   : > { %v1785_v18 = vmax.f32 %v1783_v16, %v1784_v17 }
 0x261   : > { %1786 = vst [vmem:[%s363_s13] sm:$0xff] %v1785_v18 }
 0x262 PF: > { %s16_s20 = sadd.s32 1, %s2443_s20   ;;  %s3007_s18 = smov %s2439_s19 }
 0x263   : > { %p13_p5 = scmp.ge.s32.totalorder %s16_s20, 4   ;;  %s3008_s19 = smov %s3010_s21 }
 0x265   :  { %15 = sbr.rel (!%p13_p5) target bundleno = 2 (0x2), region = 81 }

</bundles_post_ra>
